<compile_context>
chip_gen: v5e
topology: v5e:2x2
jax: 0.10.0
libtpu: 0.0.40
codegen_flags: <defaults>
</compile_context>

<pallas_src>
import functools

import jax
import jax.numpy as jnp
from jax.experimental import pallas as pl
from jax.experimental.pallas import tpu as pltpu

CONFIG = dict(
    num_rel=8,          # -> NO_OP = 18, rPAD = 17
    num_ent=32,         # embedding table rows (must cover relation ids)
    rel_dim=32,
    state_dim=32,
    cuda=False,
    dataset="synthetic",
)


def _hl_lstm_state_kernel(ids_smem_ref, ids_vmem_ref, rel_ref, q_ref, wih_ref, b_ref,
                          out_ref, x_scratch, *, no_op):
    """Fused gather + LSTMCell(zero state) + NO_OP mask + state concat.

    ids_smem_ref : (B,)  int32, SMEM   gather indices (prev_relations)
    ids_vmem_ref : (B,1) int32, VMEM   same ids, for the NO_OP compare in-vreg
    rel_ref      : (num_ent, rel_dim)  relation embedding table
    q_ref        : (B, Q)              query relation embeddings
    wih_ref      : (rel_dim, 4H)       weight_ih.T (pre-transposed)
    b_ref        : (1, 4H)             bias_ih + bias_hh (pre-summed)
    out_ref      : (B, 3H + Q)         packed [hx | cx | hx | q]
    x_scratch    : (B, rel_dim) VMEM   gathered prev-relation embeddings
    """
    B, _ = x_scratch.shape
    H = wih_ref.shape[1] // 4

    # ---- fused embedding gather: x[b] = rel_embs[prev_relations[b]] ----
    for b in range(B):                                   # B small & static -> unrolled
        x_scratch[pl.ds(b, 1), :] = rel_ref[pl.ds(ids_smem_ref[b], 1), :]
    x = x_scratch[...]

    # ---- LSTMCell with hx0 = cx0 = 0: whh matmul and f*cx are identically zero ----
    gates = jnp.dot(x, wih_ref[...], preferred_element_type=jnp.float32) + b_ref[...]

    # One full-vreg activation pass: tanh on the g lanes (2H..3H), sigmoid elsewhere.
    lane = jax.lax.broadcasted_iota(jnp.int32, gates.shape, 1)
    is_g = jnp.logical_and(lane >= 2 * H, lane < 3 * H)
    act = jnp.where(is_g, jnp.tanh(gates), jax.nn.sigmoid(gates))

    i = act[:, 0 * H:1 * H]          # input gate
    g = act[:, 2 * H:3 * H]          # cell candidate (tanh)
    o = act[:, 3 * H:4 * H]          # output gate     (f gate unused: f*cx0 == 0)

    cx_new = i * g
    hx_new = o * jnp.tanh(cx_new)

    # NO_OP mask: keep the (zero) old state where prev_relation == NO_OP.
    keep = (ids_vmem_ref[...] != no_op).astype(jnp.float32)      # (B, 1), broadcasts over lanes
    hx_sel = hx_new * keep
    cx_sel = cx_new * keep

    # Single lane-dense store: [hx | cx | state], state = [hx | q].
    out_ref[...] = jnp.concatenate([hx_sel, cx_sel, hx_sel, q_ref[...]], axis=-1)


def init_params(key, config):
    """Deterministic parameter init (matches torch layer shapes).

    w_ih_t / bias are precomputed once here (perf: no per-call transpose / add)."""
    num_ent, rel_dim, H = config["num_ent"], config["rel_dim"], config["state_dim"]
    k_emb, k1, k2, k3, k4 = jax.random.split(key, 5)
    bound = 1.0 / jnp.sqrt(jnp.float32(H))
    u = lambda k, shp: jax.random.uniform(k, shp, jnp.float32, -bound, bound)
    w_ih = u(k1, (4 * H, rel_dim))
    w_hh = u(k2, (4 * H, H))          # kept for module fidelity; dead math (hx0 == 0)
    b_ih = u(k3, (4 * H,))
    b_hh = u(k4, (4 * H,))
    return dict(
        rel_embs=jax.random.normal(k_emb, (num_ent, rel_dim), jnp.float32),
        w_ih=w_ih, w_hh=w_hh, b_ih=b_ih, b_hh=b_hh,
        w_ih_t=jnp.asarray(w_ih.T),                 # (rel_dim, 4H)
        bias=(b_ih + b_hh)[None, :],                # (1, 4H)
    )


def high_level_agent_forward(params, prev_relations, query_relation_embds, hl_space, config):
    num_rel = config["num_rel"]
    NO_OP = num_rel * 2 + 2
    rPAD = num_rel * 2 + 1
    H = config["state_dim"]
    rel_dim = config["rel_dim"]
    B = prev_relations.shape[0]
    Q = query_relation_embds.shape[-1]

    rel_table = params["rel_embs"]
    num_ent = rel_table.shape[0]

    # --- glue kept in XLA: (B, R) neighbor gather + pad mask (outputs of forward) ---
    neighbors_relations = rel_table[hl_space[:, :, 0]]               # (B, R, rel_dim)
    pad_mask_hl = hl_space[:, :, 0] == rPAD                          # (B, R) bool

    prev_ids = prev_relations.astype(jnp.int32)

    smem = pl.BlockSpec(memory_space=pltpu.MemorySpace.SMEM)
    vmem = pl.BlockSpec(memory_space=pltpu.MemorySpace.VMEM)

    cost = pl.CostEstimate(
        flops=2 * B * rel_dim * 4 * H + 12 * B * H,
        transcendentals=5 * B * H,
        bytes_accessed=4 * (num_ent * rel_dim + rel_dim * 4 * H + 4 * H
                            + B * (2 + Q) + B * (3 * H + Q)),
    )

    # Single-program kernel: total working set is a few KB, far under scoped VMEM
    # on v5e/v6e/v7x, so no grid / extra buffering.  (If B grows, add a "parallel"
    # batch grid axis so v7x can use both TensorCores.)
    packed = pl.pallas_call(
        functools.partial(_hl_lstm_state_kernel, no_op=NO_OP),
        out_shape=jax.ShapeDtypeStruct((B, 3 * H + Q), jnp.float32),
        in_specs=[smem, vmem, vmem, vmem, vmem, vmem],
        out_specs=vmem,
        scratch_shapes=[pltpu.VMEM((B, rel_dim), jnp.float32)],
        cost_estimate=cost,
    )(prev_ids,                                       # (B,)   SMEM gather indices
      prev_ids[:, None],                              # (B,1)  VMEM for NO_OP compare
      rel_table.astype(jnp.float32),                  # (num_ent, rel_dim)
      query_relation_embds.astype(jnp.float32),       # (B, Q)
      params["w_ih_t"],                               # (rel_dim, 4H)
      params["bias"])                                 # (1, 4H)

    hx_new = packed[:, :H]                            # lstm_output (policy_step return)
    cx_new = packed[:, H:2 * H]
    state = packed[:, 2 * H:]                         # transit_high_agent_state = [hx | q]

    return dict(
        lstm_output=hx_new,
        cx=cx_new,
        transit_high_agent_state=state,
        neighbors_relations=neighbors_relations,
        pad_mask_hl=pad_mask_hl,
    )
    # TODO(synk): rel_text_embd / query_rel branch is None in the reference config;
    # transit_high / sample_high (multinomial sampling + loss) are separate methods,
    # not part of forward().


def _reference(params, prev_relations, query_relation_embds, hl_space, config):
    """Pure-JAX reference (full LSTMCell incl. the dead whh term) for correctness."""
    num_rel = config["num_rel"]
    NO_OP = num_rel * 2 + 2
    H = config["state_dim"]
    B = prev_relations.shape[0]
    x = params["rel_embs"][prev_relations]
    hx = jnp.zeros((B, H), jnp.float32)
    cx = jnp.zeros((B, H), jnp.float32)
    gates = x @ params["w_ih"].T + hx @ params["w_hh"].T + params["b_ih"] + params["b_hh"]
    i = jax.nn.sigmoid(gates[:, 0 * H:1 * H])
    f = jax.nn.sigmoid(gates[:, 1 * H:2 * H])
    g = jnp.tanh(gates[:, 2 * H:3 * H])
    o = jax.nn.sigmoid(gates[:, 3 * H:4 * H])
    cx_new = f * cx + i * g
    hx_new = o * jnp.tanh(cx_new)
    mask = (prev_relations == NO_OP)[:, None]
    hx_sel = jnp.where(mask, hx, hx_new)
    cx_sel = jnp.where(mask, cx, cx_new)
    state = jnp.concatenate([hx_sel, query_relation_embds], axis=-1)
    return hx_sel, cx_sel, state


if __name__ == "__main__":
    cfg = CONFIG
    B, R = 4, 8
    key = jax.random.PRNGKey(0)
    k_par, k_prev, k_q, k_space = jax.random.split(key, 4)

    params = init_params(k_par, cfg)

    NO_OP = cfg["num_rel"] * 2 + 2
    rPAD = cfg["num_rel"] * 2 + 1

    prev_relations = jax.random.randint(k_prev, (B,), 0, NO_OP + 1, dtype=jnp.int32)
    prev_relations = prev_relations.at[0].set(NO_OP)    # exercise NO_OP mask path
    query_relation_embds = jax.random.normal(k_q, (B, cfg["rel_dim"]), jnp.float32)
    hl_space = jax.random.randint(k_space, (B, R, 2), 0, rPAD + 1, dtype=jnp.int32)
    hl_space = hl_space.at[:, -1, 0].set(rPAD)          # exercise pad mask path

    out = high_level_agent_forward(params, prev_relations, query_relation_embds, hl_space, cfg)
    jax.block_until_ready(out)

    ref_hx, ref_cx, ref_state = _reference(params, prev_relations, query_relation_embds,
                                           hl_space, cfg)
    assert jnp.allclose(out["lstm_output"], ref_hx, atol=1e-5), "lstm output mismatch"
    assert jnp.allclose(out["cx"], ref_cx, atol=1e-5), "cell state mismatch"
    assert jnp.allclose(out["transit_high_agent_state"], ref_state, atol=1e-5), "state mismatch"
    assert bool(jnp.all(out["pad_mask_hl"] == (hl_space[:, :, 0] == rPAD))), "pad mask mismatch"

    print("KERNEL_OK")
</pallas_src>

<mosaic_0001>
module attributes {stable_mosaic.version = 11 : i64} {
  func.func @_hl_lstm_state_kernel(%arg0: memref<4xi32, #tpu.memory_space<smem>>, %arg1: memref<4x1xi32, #tpu.memory_space<vmem>>, %arg2: memref<32x32xf32, #tpu.memory_space<vmem>>, %arg3: memref<4x32xf32, #tpu.memory_space<vmem>>, %arg4: memref<32x128xf32, #tpu.memory_space<vmem>>, %arg5: memref<1x128xf32, #tpu.memory_space<vmem>>, %arg6: memref<4x128xf32, #tpu.memory_space<vmem>>, %arg7: memref<4x32xf32, #tpu.memory_space<vmem>>) attributes {dimension_semantics = [], scalar_prefetch = 0 : i64, scratch_operands = 1 : i64, tpu.core_type = #tpu.core_type<tc>} {
    %c0 = arith.constant 0 : index
    %0 = memref.load %arg0[%c0] : memref<4xi32, #tpu.memory_space<smem>>
    %1 = arith.index_cast %0 : i32 to index
    %c0_0 = arith.constant 0 : index
    %2 = vector.load %arg2[%1, %c0_0] : memref<32x32xf32, #tpu.memory_space<vmem>>, vector<1x32xf32>
    %c0_1 = arith.constant 0 : index
    %c0_2 = arith.constant 0 : index
    %3 = vector.load %arg7[%c0_1, %c0_2] : memref<4x32xf32, #tpu.memory_space<vmem>>, vector<1x32xf32>
    tpu.vector_store %arg7[%c0_1, %c0_2], %2 {strides = array<i32>} : memref<4x32xf32, #tpu.memory_space<vmem>>, vector<1x32xf32>,
    %c1 = arith.constant 1 : index
    %4 = memref.load %arg0[%c1] : memref<4xi32, #tpu.memory_space<smem>>
    %5 = arith.index_cast %4 : i32 to index
    %c0_3 = arith.constant 0 : index
    %6 = vector.load %arg2[%5, %c0_3] : memref<32x32xf32, #tpu.memory_space<vmem>>, vector<1x32xf32>
    %c1_4 = arith.constant 1 : index
    %c0_5 = arith.constant 0 : index
    %7 = vector.load %arg7[%c1_4, %c0_5] : memref<4x32xf32, #tpu.memory_space<vmem>>, vector<1x32xf32>
    tpu.vector_store %arg7[%c1_4, %c0_5], %6 {strides = array<i32>} : memref<4x32xf32, #tpu.memory_space<vmem>>, vector<1x32xf32>,
    %c2 = arith.constant 2 : index
    %8 = memref.load %arg0[%c2] : memref<4xi32, #tpu.memory_space<smem>>
    %9 = arith.index_cast %8 : i32 to index
    %c0_6 = arith.constant 0 : index
    %10 = vector.load %arg2[%9, %c0_6] : memref<32x32xf32, #tpu.memory_space<vmem>>, vector<1x32xf32>
    %c2_7 = arith.constant 2 : index
    %c0_8 = arith.constant 0 : index
    %11 = vector.load %arg7[%c2_7, %c0_8] : memref<4x32xf32, #tpu.memory_space<vmem>>, vector<1x32xf32>
    tpu.vector_store %arg7[%c2_7, %c0_8], %10 {strides = array<i32>} : memref<4x32xf32, #tpu.memory_space<vmem>>, vector<1x32xf32>,
    %c3 = arith.constant 3 : index
    %12 = memref.load %arg0[%c3] : memref<4xi32, #tpu.memory_space<smem>>
    %13 = arith.index_cast %12 : i32 to index
    %c0_9 = arith.constant 0 : index
    %14 = vector.load %arg2[%13, %c0_9] : memref<32x32xf32, #tpu.memory_space<vmem>>, vector<1x32xf32>
    %c3_10 = arith.constant 3 : index
    %c0_11 = arith.constant 0 : index
    %15 = vector.load %arg7[%c3_10, %c0_11] : memref<4x32xf32, #tpu.memory_space<vmem>>, vector<1x32xf32>
    tpu.vector_store %arg7[%c3_10, %c0_11], %14 {strides = array<i32>} : memref<4x32xf32, #tpu.memory_space<vmem>>, vector<1x32xf32>,
    %c0_12 = arith.constant 0 : index
    %c0_13 = arith.constant 0 : index
    %16 = vector.load %arg7[%c0_12, %c0_13] : memref<4x32xf32, #tpu.memory_space<vmem>>, vector<4x32xf32>
    %c0_14 = arith.constant 0 : index
    %c0_15 = arith.constant 0 : index
    %17 = vector.load %arg4[%c0_14, %c0_15] : memref<32x128xf32, #tpu.memory_space<vmem>>, vector<32x128xf32>
    %cst = arith.constant dense<0.000000e+00> : vector<4x128xf32>
    %18 = tpu.matmul %16, %17, %cst {dimension_numbers = #tpu.dot_dimension_numbers<[1], [0], [0], [1], [0, 0, 1, 1], [], []>} : vector<4x32xf32>, vector<32x128xf32>, vector<4x128xf32> -> vector<4x128xf32>
    %c0_16 = arith.constant 0 : index
    %c0_17 = arith.constant 0 : index
    %19 = vector.load %arg5[%c0_16, %c0_17] : memref<1x128xf32, #tpu.memory_space<vmem>>, vector<1x128xf32>
    %20 = vector.broadcast %19 : vector<1x128xf32> to vector<4x128xf32>
    %21 = arith.addf %18, %20 : vector<4x128xf32>
    %22 = tpu.iota {dimensions = array<i32: 1>} : vector<4x128xi32>
    %c64_i32 = arith.constant 64 : i32
    %23 = vector.broadcast %c64_i32 : i32 to vector<4x128xi32>
    %24 = arith.cmpi sge, %22, %23 : vector<4x128xi32>
    %c96_i32 = arith.constant 96 : i32
    %25 = vector.broadcast %c96_i32 : i32 to vector<4x128xi32>
    %26 = arith.cmpi slt, %22, %25 : vector<4x128xi32>
    %27 = arith.andi %24, %26 : vector<4x128xi1>
    %28 = math.tanh %21 : vector<4x128xf32>
    %29 = arith.negf %21 : vector<4x128xf32>
    %30 = math.exp %29 : vector<4x128xf32>
    %cst_18 = arith.constant 1.000000e+00 : f32
    %31 = vector.broadcast %cst_18 : f32 to vector<4x128xf32>
    %32 = arith.addf %31, %30 : vector<4x128xf32>
    %33 = arith.divf %31, %32 : vector<4x128xf32>
    %34 = arith.select %27, %28, %33 : vector<4x128xi1>, vector<4x128xf32>
    %35 = vector.extract_strided_slice %34 {offsets = [0, 0], sizes = [4, 32], strides = [1, 1]} : vector<4x128xf32> to vector<4x32xf32>
    %36 = vector.extract_strided_slice %34 {offsets = [0, 64], sizes = [4, 32], strides = [1, 1]} : vector<4x128xf32> to vector<4x32xf32>
    %37 = vector.extract_strided_slice %34 {offsets = [0, 96], sizes = [4, 32], strides = [1, 1]} : vector<4x128xf32> to vector<4x32xf32>
    %38 = arith.mulf %35, %36 : vector<4x32xf32>
    %39 = math.tanh %38 : vector<4x32xf32>
    %40 = arith.mulf %37, %39 : vector<4x32xf32>
    %c0_19 = arith.constant 0 : index
    %c0_20 = arith.constant 0 : index
    %41 = vector.load %arg1[%c0_19, %c0_20] : memref<4x1xi32, #tpu.memory_space<vmem>>, vector<4x1xi32>
    %c18_i32 = arith.constant 18 : i32
    %42 = vector.broadcast %c18_i32 : i32 to vector<4x1xi32>
    %43 = arith.cmpi ne, %41, %42 : vector<4x1xi32>
    %44 = arith.extui %43 : vector<4x1xi1> to vector<4x1xi32>
    %45 = arith.sitofp %44 : vector<4x1xi32> to vector<4x1xf32>
    %46 = vector.broadcast %45 : vector<4x1xf32> to vector<4x32xf32>
    %47 = arith.mulf %40, %46 : vector<4x32xf32>
    %48 = vector.broadcast %45 : vector<4x1xf32> to vector<4x32xf32>
    %49 = arith.mulf %38, %48 : vector<4x32xf32>
    %c0_21 = arith.constant 0 : index
    %c0_22 = arith.constant 0 : index
    %50 = vector.load %arg3[%c0_21, %c0_22] : memref<4x32xf32, #tpu.memory_space<vmem>>, vector<4x32xf32>
    %51 = tpu.concatenate %47, %49, %47, %50 in 1 : vector<4x32xf32>, vector<4x32xf32>, vector<4x32xf32>, vector<4x32xf32> -> vector<4x128xf32>
    %c0_23 = arith.constant 0 : index
    %c0_24 = arith.constant 0 : index
    %52 = vector.load %arg6[%c0_23, %c0_24] : memref<4x128xf32, #tpu.memory_space<vmem>>, vector<4x128xf32>
    tpu.vector_store %arg6[%c0_23, %c0_24], %51 {strides = array<i32>} : memref<4x128xf32, #tpu.memory_space<vmem>>, vector<4x128xf32>,
    return
  }
}

</mosaic_0001>

<bundles_post_ra>
// kernel: tpu_custom_call.1
= control target key start
LH: loop header
LB: loop body
LE: loop exit
PB: predicated region body
PF: predicated region fallthrough
CT: control target
= control target key end

     0   :  { %11 = vsyncpa [#allocation6], 0  ;;  %s401_s0 = inlined_call_operand.vmem [shape: s32[4], index: 0, kind: input, shape index: {}]   ;;  %s402_s1 = inlined_call_operand.vmem [shape: s32[4,1], index: 1, kind: input, shape index: {}]   ;;  %s403_s2 = inlined_call_operand.hbm [shape: f32[32,32], index: 2, kind: input, shape index: {}]   ;;  %s404_s3 = inlined_call_operand.vmem [shape: f32[4,32], index: 3, kind: input, shape index: {}]   ;;  %s405_s4 = inlined_call_operand.hbm [shape: f32[32,128], index: 4, kind: input, shape index: {}]   ;;  %s406_s5 = inlined_call_operand.vmem [shape: f32[1,128], index: 5, kind: input, shape index: {}]   ;;  %s407_s6 = inlined_call_operand.hbm [shape: f32[4,128], index: 6, kind: output, shape index: {}]  }
   0x1   :  { %12 = vsyncpa [#allocation4], 0 }
   0x2   :  { %13 = vsyncpa [#allocation9], 0 }
   0x3   :  { %14 = vsyncpa [#allocation5], 0  ;;  %s20_s23 = sshll.u32 %s401_s0, 4  ;;  %s30_s26 = sshll.u32 %s403_s2, 4  ;;  %s21_s23 = int_to_ptr.vmem [resolvable:$true] %s20_s23  ;;  %s31_s26 = int_to_ptr.hbm [resolvable:$true] %s30_s26 }
   0x4   :  { %s332_s27 = smov [#allocation3]   ;;  %s333_s28 = smov [#allocation7]  }
   0x5   :  { %23 = dma.vmem_to_smem %s21_s23, 16, %s332_s27, [#allocation6]  }
   0x6   :  { %s32_s29 = sshll.u32 %s333_s28, 4  ;;  %s334_s30 = smov 128   ;;  %s33_s29 = int_to_ptr.vmem [resolvable:$true] %s32_s29 }
   0x7   :  { %s335_s7 = smov 8   ;;  %s45_s10 = sshll.u32 %s405_s4, 4  ;;  %s46_s10 = int_to_ptr.hbm [resolvable:$true] %s45_s10 }
   0x8   :  { %38 = dma.hbm_to_vmem [thread:$0]  %s31_s26, 512, %s33_s29, [#allocation4], %s334_s30, %s334_s30, %s335_s7  }
   0x9   :  { %s336_s0 = smov [#allocation8]  }
   0xa   :  { %s47_s11 = sshll.u32 %s336_s0, 4  ;;  %s48_s11 = int_to_ptr.vmem [resolvable:$true] %s47_s11 }
   0xb   :  { %53 = dma.hbm_to_vmem [thread:$0]  %s46_s10, 512, %s48_s11, [#allocation9], %s334_s30, %s334_s30, %s335_s7  }
   0xc   :  { %324 = dma.done.wait [#allocation6], 16  }
   0xd   :  { %325 = vsyncadd [#allocation6], 4294967280 }
   0xe   :  { %326 = dma.done.wait [#allocation4], 512  }
   0xf   :  { %327 = vsyncadd [#allocation4], 4294966784 }
  0x10   :  { %328 = dma.done.wait [#allocation9], 512  }
  0x11   :  { %329 = vsyncadd [#allocation9], 4294966784 }
  0x12   :  { %68 = sfence }
  0x13   :  { %v90_v0 = vld [vmem:[#allocation8 + $0x18] sm:$0xff]  ;;  %v89_v1 = vld [vmem:[#allocation8 + $0x10] sm:$0xff]  ;;  %s69_s2 = sld [smem:[#allocation3]]  ;;  %v88_v2 = vld [vmem:[#allocation8 + $0x8] sm:$0xff]  ;;  %vm72_vm0 = vcmask 253952   ;;  %vm95_vm1 = vcmask 261120   ;;  %v119_v19 = vlaneseq }
  0x14   :  { %111 = vmatpush.msra.mxu0 %v90_v0  ;;  %s212_s12 = sld [smem:[#allocation3 + $0x1]]  ;;  %v87_v3 = vld [vmem:[#allocation8] sm:$0xff]  ;;  %v231_v9 = vld [vmem:[%s406_s5] ss:$0 sm:$0xff]  ;;  %v337_v13 = vmov 0   ;;  %v338_v14 = vmov 0.0  }
  0x15   :  { %s213_s13 = sld [smem:[#allocation3 + $0x2]]  ;;  %v156_v10 = vld [vmem:[%s402_s1] sm:$0xf]  ;;  %229 = vset.pattern.permute.xlu1 %v337_v13  ;;  %230 = vset.pattern.permute.xlu0 %v337_v13  ;;  %v120_v21 = vand.u32 127, %v119_v19  ;;  %s339_s1 = smov 64   ;;  %vm184_vm10 = vcmask 523264  }
  0x16   :  { %112 = vmatpush.msra.mxu0 %v89_v1  ;;  %s214_s4 = sld [smem:[#allocation3 + $0x3]]  ;;  %vm157_vm2 = vcmp.ne.s32.totalorder %v156_v10, 18  ;;  %s340_s5 = smov 32   ;;  %v167_v38 = vld [vmem:[%s404_s3] sm:$0xf]  ;;  %vm186_vm11 = vcmask 785408  }
  0x17   :  { %v217_v15 = vsel %vm157_vm2, 1.0, %v338_v14  ;;  %vm121_vm3 = vcmp.ge.s32.totalorder %v120_v21, 64  ;;  %vm122_vm4 = vcmp.lt.s32.totalorder %v120_v21, 96  ;;  %s341_s22 = smov 96   ;;  %s342_s25 = smov [#allocation10]  }
  0x18   :  { %113 = vmatpush.msra.mxu0 %v88_v2  ;;  %162 = vperm.xlu1 %229, %v217_v15   ;;  %vm123_vm6 = vmand %vm121_vm3, %vm122_vm4  ;;  %s194_s26 = sshll.u32 %s342_s25, 4  ;;  %s196_s29 = sshll.u32 %s407_s6, 4  ;;  %s195_s26 = int_to_ptr.vmem [resolvable:$true] %s194_s26  ;;  %s197_s29 = int_to_ptr.hbm [resolvable:$true] %s196_s29 }
  0x19   :  { %s70_s14 = scalar_lea.vmem [#allocation7], %s69_s2 }
  0x1a   :  { %114 = vmatpush.msra.mxu0 %v87_v3  ;;  %v71_v4 = vld [vmem:[%s70_s14] sm:$0x1]  ;;  %s75_s15 = scalar_lea.vmem [#allocation7], %s212_s12 }
  0x1b   :  { %73 = vst.msk [vmem:[#allocation2] sm:$0x1] %vm72_vm0, %v71_v4  ;;  %v76_v5 = vld [vmem:[%s75_s15] sm:$0x1]  ;;  %s79_s16 = scalar_lea.vmem [#allocation7], %s213_s13 }
  0x1c   :  { %77 = vst.msk [vmem:[#allocation2 + $0x1] sm:$0x1] %vm72_vm0, %v76_v5  ;;  %v80_v6 = vld [vmem:[%s79_s16] sm:$0x1]  ;;  %s83_s17 = scalar_lea.vmem [#allocation7], %s214_s4 }
  0x1d   :  { %81 = vst.msk [vmem:[#allocation2 + $0x2] sm:$0x1] %vm72_vm0, %v80_v6  ;;  %v84_v7 = vld [vmem:[%s83_s17] sm:$0x1] }
  0x1e   :  { %85 = vst.msk [vmem:[#allocation2 + $0x3] sm:$0x1] %vm72_vm0, %v84_v7 }
  0x25   :  { %v86_v8 = vld [vmem:[#allocation2] sm:$0xf] }
  0x26   :  { %215 = vmatmul.msk.f32.vlgmr.msra.gmra.mxu0 %vm95_vm1, %v86_v8 }
  0x8a   :  { %v163_v34 = vpop.permute.xlu1 %162 }
  0xa3   :  { %v116_v11 = vpop.f32.mrf.mxu0 }
  0xa4   :  { %v117_v12 = vadd.f32 %v231_v9, %v116_v11 }
  0xa6   :  { %v216_v16 = vmul.f32 -1.442695, %v117_v12 }
  0xa8   :  { %232 = vpow2.f32 %v216_v16 }
  0xae   :  { %v233_v17 = vpop.eup %232 }
  0xaf   :  { %v128_v18 = vadd.f32 1.0, %v233_v17 }
  0xb1   :  { %234 = vrcp.f32 %v128_v18  ;;  %v140_v24 = vand.u32 2147483648, %v128_v18  ;;  %v138_v26 = vand.u32 2147483647, %v128_v18  ;;  %vm134_vm7 = vweird.f32 %v128_v18 }
  0xb2   :  { %236 = vtanh.f32 %v117_v12 }
  0xb3   :  { %v141_v28 = vor.u32 1.1754944e-38, %v140_v24  ;;  %vm139_vm9 = vcmp.eq.f32.partialorder %v138_v26, 8.507059e+37 }
  0xb7   :  { %v235_v20 = vpop.eup %234 }
  0xb8   :  { %v130_v22 = vmul.f32 %v235_v20, %v128_v18  ;;  %vm135_vm5 = vweird.f32 %v235_v20  ;;  %v237_v30 = vpop.eup %236 }
  0xb9   :  { %vm136_vm8 = vmor %vm134_vm7, %vm135_vm5 }
  0xba   :  { %v131_v23 = vsub.f32 1.0, %v130_v22 }
  0xbc   :  { %v132_v25 = vmul.f32 %v235_v20, %v131_v23 }
  0xbe   :  { %v133_v27 = vadd.f32 %v235_v20, %v132_v25 }
  0xc0   :  { %v137_v29 = vsel %vm136_vm8, %v235_v20, %v133_v27 }
  0xc1   :  { %v142_v31 = vsel %vm139_vm9, %v141_v28, %v137_v29 }
  0xc2   :  { %v144_v32 = vsel %vm123_vm6, %v237_v30, %v142_v31 }
  0xc3   :  { %146 = vrot.lane.b32.xlu0 %v144_v32, %s339_s1 }
 0x135   :  { %v147_v33 = vpop.permute.xlu0 %146 }
 0x136   :  { %v149_v35 = vmul.f32 %v147_v33, %v144_v32 }
 0x138   :  { %238 = vtanh.f32 %v149_v35  ;;  %v166_v36 = vmul.f32 %v163_v34, %v149_v35 }
 0x13a   :  { %173 = vrot.lane.b32.xlu2 %v166_v36, %s340_s5 }
 0x13e   :  { %v239_v37 = vpop.eup %238 }
 0x13f   :  { %152 = vrot.lane.b32.xlu0 %v239_v37, %s341_s22 }
 0x147   :  { %180 = vrot.lane.b32.xlu0 %v167_v38, %s341_s22 }
 0x194   :  { %v174_v42 = vpop.permute.xlu2 %173 }
 0x1b1   :  { %v153_v39 = vpop.permute.xlu0 %152 }
 0x1b2   :  { %v155_v40 = vmul.f32 %v153_v39, %v144_v32 }
 0x1b4   :  { %v165_v41 = vmul.f32 %v163_v34, %v155_v40 }
 0x1b6   :  { %176 = vrot.lane.b32.xlu2 %v165_v41, %s341_s22  ;;  %169 = vrot.lane.b32.xlu1 %v165_v41, %s340_s5 }
 0x1b9   :  { %v181_v44 = vpop.permute.xlu0 %180 }
 0x210   :  { %v177_v45 = vpop.permute.xlu2 %176 }
 0x228   :  { %v170_v43 = vpop.permute.xlu1 %169 }
 0x229   :  { %v183_v46 = vsel %vm95_vm1, %v170_v43, %v174_v42 }
 0x22a   :  { %v185_v47 = vsel %vm184_vm10, %v183_v46, %v177_v45 }
 0x22b   :  { %v187_v48 = vsel %vm186_vm11, %v185_v47, %v181_v44 }
 0x22c   :  { %188 = vst [vmem:[#allocation10] sm:$0xf] %v187_v48 }
 0x22d   :  { %199 = dma.vmem_to_hbm [thread:$0]  %s195_s26, 64, %s197_s29, [#allocation5]  }
 0x22e   :  { %330 = dma.done.wait [#allocation5], 64  }
 0x22f   :  { %331 = vsyncadd [#allocation5], 4294967232 }
 0x230   :  { %204 = vsyncpa [#allocation4], 1 }
 0x231   :  { %205 = vsyncpa [#allocation9], 1 }
 0x232   :  { %206 = vsyncpa [#allocation5], 1 }
 0x233   :  { %207 = vsyncpa [#allocation6], 1 }

</bundles_post_ra>
